<compile_context>
chip_gen: v7x
topology: tpu7x:2x2x1
jax: 0.10.0
libtpu: 0.0.40
codegen_flags: <defaults>
</compile_context>

<pallas_src>
import functools

import jax
import jax.numpy as jnp
from jax import lax
from jax.experimental import pallas as pl
from jax.experimental.pallas import tpu as pltpu


def _fused_embed_layernorm_kernel(we_ref, pe_ref, oh_ref, tab_ref, g_ref, b_ref,
                                  o_ref, *, eps):
    # we_ref : (1, ts, H)  gathered word embeddings for this (batch, seq-tile)
    # pe_ref : (ts, H)     position-embedding table slice for this seq-tile
    # oh_ref : (1, ts, T)  token-type one-hot
    # tab_ref: (T, H)      token-type embedding table (resident across grid)
    # g_ref/b_ref: (1, H)  LayerNorm gamma / beta (resident across grid)
    x = we_ref[0].astype(jnp.float32) + pe_ref[...].astype(jnp.float32)

    # Token-type embedding: sum_t onehot[:, t] * table[t, :].  T is a static,
    # tiny Python int (2 for BERT) -> a couple of VPU broadcast-mult/adds,
    # no MXU / no gather needed.
    oh = oh_ref[0].astype(jnp.float32)          # (ts, T)
    tab = tab_ref[...].astype(jnp.float32)      # (T, H)
    num_types = tab.shape[0]
    for t in range(num_types):
        x = x + oh[:, t:t + 1] * tab[t:t + 1, :]

    # TF-style LayerNorm over the hidden dim (eps inside the sqrt).
    inv_h = jnp.float32(1.0 / x.shape[-1])
    mean = jnp.sum(x, axis=-1, keepdims=True) * inv_h
    d = x - mean
    var = jnp.sum(d * d, axis=-1, keepdims=True) * inv_h
    y = d * lax.rsqrt(var + jnp.float32(eps))   # rsqrt -> EUP slot

    g = g_ref[...].astype(jnp.float32)
    b = b_ref[...].astype(jnp.float32)
    o_ref[0] = (g * y + b).astype(o_ref.dtype)


def bert_embeddings(input_ids, word_emb, pos_emb, type_emb, gamma, beta,
                    token_type_ids=None, *, eps=1e-12, tile_seq=512,
                    vmem_limit_bytes=32 * 1024 * 1024):
    """BertEmbeddings.forward: word gather (XLA) + fused pos/type add + LayerNorm (Pallas)."""
    B, S = input_ids.shape
    H = word_emb.shape[-1]
    T = type_emb.shape[0]
    if token_type_ids is None:
        token_type_ids = jnp.zeros_like(input_ids)

    # Data-dependent word gather stays in XLA.
    words = jnp.take(word_emb, input_ids, axis=0)                      # [B, S, H]
    # Tiny one-hot instead of a materialized [B, S, H] token-type gather.
    tt_onehot = jax.nn.one_hot(token_type_ids, T, dtype=jnp.float32)   # [B, S, T]

    # Seq tiling: big blocks, no host-side padding; round to sublane multiple.
    ts = min(tile_seq, S)
    ts = max(8, ((ts + 7) // 8) * 8)
    grid = (pl.cdiv(S, ts), B)        # batch innermost -> pos/table blocks constant

    kernel = functools.partial(_fused_embed_layernorm_kernel, eps=eps)

    out = pl.pallas_call(
        kernel,
        out_shape=jax.ShapeDtypeStruct((B, S, H), word_emb.dtype),
        grid_spec=pltpu.PrefetchScalarGridSpec(
            num_scalar_prefetch=0,
            grid=grid,
            in_specs=[
                pl.BlockSpec((1, ts, H), lambda s, b: (b, s, 0)),   # word embeddings
                pl.BlockSpec((ts, H),    lambda s, b: (s, 0)),      # position table slice
                pl.BlockSpec((1, ts, T), lambda s, b: (b, s, 0)),   # token-type one-hot
                pl.BlockSpec((T, H),     lambda s, b: (0, 0)),      # type table (resident)
                pl.BlockSpec((1, H),     lambda s, b: (0, 0)),      # gamma (resident)
                pl.BlockSpec((1, H),     lambda s, b: (0, 0)),      # beta (resident)
            ],
            out_specs=pl.BlockSpec((1, ts, H), lambda s, b: (b, s, 0)),
        ),
        compiler_params=pltpu.CompilerParams(
            dimension_semantics=("parallel", "parallel"),   # megacore splits the grid
            vmem_limit_bytes=vmem_limit_bytes,
        ),
    )(words, pos_emb, tt_onehot, type_emb, gamma.reshape(1, H), beta.reshape(1, H))

    # Dropout: identity in inference mode.
    return out


def _reference_bert_embeddings(input_ids, token_type_ids, word_emb, pos_emb,
                               type_emb, gamma, beta, eps=1e-12):
    B, S = input_ids.shape
    position_ids = jnp.broadcast_to(jnp.arange(S, dtype=jnp.int32)[None, :], (B, S))
    x = (word_emb[input_ids] + pos_emb[position_ids] + type_emb[token_type_ids]
         ).astype(jnp.float32)
    u = jnp.mean(x, axis=-1, keepdims=True)
    s = jnp.mean((x - u) ** 2, axis=-1, keepdims=True)
    y = (x - u) / jnp.sqrt(s + eps)
    return (gamma * y + beta).astype(word_emb.dtype)


if __name__ == "__main__":
    key = jax.random.PRNGKey(0)
    batch, seq, hidden = 2, 8, 32
    vocab_size, max_pos, type_vocab = 30, 16, 2
    # hidden=32 (< 128 lanes) is fine: each block spans the full hidden dim;
    # real BERT sizes (768/1024) are lane-dense multiples of 128.

    k1, k2, k3, k4, k5, k6, k7 = jax.random.split(key, 7)
    word_emb = 0.02 * jax.random.normal(k1, (vocab_size, hidden), jnp.float32)
    word_emb = word_emb.at[0].set(0.0)        # padding_idx=0 row is zeros
    pos_emb = 0.02 * jax.random.normal(k2, (max_pos, hidden), jnp.float32)
    type_emb = 0.02 * jax.random.normal(k3, (type_vocab, hidden), jnp.float32)
    gamma = jnp.ones((hidden,), jnp.float32) + 0.1 * jax.random.normal(k4, (hidden,))
    beta = jnp.zeros((hidden,), jnp.float32) + 0.1 * jax.random.normal(k5, (hidden,))

    input_ids = jax.random.randint(k6, (batch, seq), 0, vocab_size, dtype=jnp.int32)
    token_type_ids = jax.random.randint(k7, (batch, seq), 0, type_vocab, dtype=jnp.int32)

    out = bert_embeddings(input_ids, word_emb, pos_emb, type_emb, gamma, beta,
                          token_type_ids=token_type_ids)
    out = jax.block_until_ready(out)

    ref = _reference_bert_embeddings(input_ids, token_type_ids, word_emb, pos_emb,
                                     type_emb, gamma, beta)
    assert out.shape == (batch, seq, hidden) and out.dtype == word_emb.dtype
    assert jnp.allclose(out, ref, atol=1e-4, rtol=1e-4), "mismatch vs reference"

    print("KERNEL_OK")
</pallas_src>

<mosaic_0001>
module attributes {stable_mosaic.version = 11 : i64} {
  func.func @_fused_embed_layernorm_kernel(%arg0: i32, %arg1: i32, %arg2: memref<1x8x32xf32, #tpu.memory_space<vmem>>, %arg3: memref<8x32xf32, #tpu.memory_space<vmem>>, %arg4: memref<1x8x2xf32, #tpu.memory_space<vmem>>, %arg5: memref<2x32xf32, #tpu.memory_space<vmem>>, %arg6: memref<1x32xf32, #tpu.memory_space<vmem>>, %arg7: memref<1x32xf32, #tpu.memory_space<vmem>>, %arg8: memref<1x8x32xf32, #tpu.memory_space<vmem>>) attributes {dimension_semantics = [#tpu.dimension_semantics<parallel>, #tpu.dimension_semantics<parallel>], iteration_bounds = array<i64: 1, 2>, scalar_prefetch = 0 : i64, scratch_operands = 0 : i64, tpu.core_type = #tpu.core_type<tc>, window_params = [{transform_indices = @transform_0, window_bounds = array<i64: 1, 8, 32>}, {transform_indices = @transform_1, window_bounds = array<i64: 8, 32>}, {transform_indices = @transform_2, window_bounds = array<i64: 1, 8, 2>}, {pipeline_mode = #tpu.pipeline_mode<synchronous>, transform_indices = @transform_3, window_bounds = array<i64: 2, 32>}, {pipeline_mode = #tpu.pipeline_mode<synchronous>, transform_indices = @transform_4, window_bounds = array<i64: 1, 32>}, {pipeline_mode = #tpu.pipeline_mode<synchronous>, transform_indices = @transform_5, window_bounds = array<i64: 1, 32>}, {transform_indices = @transform_6, window_bounds = array<i64: 1, 8, 32>}]} {
    %c0 = arith.constant 0 : index
    %c0_0 = arith.constant 0 : index
    %c0_1 = arith.constant 0 : index
    %0 = vector.load %arg2[%c0, %c0_0, %c0_1] : memref<1x8x32xf32, #tpu.memory_space<vmem>>, vector<1x8x32xf32>
    %1 = vector.shape_cast %0 : vector<1x8x32xf32> to vector<8x32xf32>
    %c0_2 = arith.constant 0 : index
    %c0_3 = arith.constant 0 : index
    %2 = vector.load %arg3[%c0_2, %c0_3] : memref<8x32xf32, #tpu.memory_space<vmem>>, vector<8x32xf32>
    %3 = arith.addf %1, %2 : vector<8x32xf32>
    %c0_4 = arith.constant 0 : index
    %c0_5 = arith.constant 0 : index
    %c0_6 = arith.constant 0 : index
    %4 = vector.load %arg4[%c0_4, %c0_5, %c0_6] : memref<1x8x2xf32, #tpu.memory_space<vmem>>, vector<1x8x2xf32>
    %5 = vector.shape_cast %4 : vector<1x8x2xf32> to vector<8x2xf32>
    %c0_7 = arith.constant 0 : index
    %c0_8 = arith.constant 0 : index
    %6 = vector.load %arg5[%c0_7, %c0_8] : memref<2x32xf32, #tpu.memory_space<vmem>>, vector<2x32xf32>
    %7 = vector.extract_strided_slice %5 {offsets = [0, 0], sizes = [8, 1], strides = [1, 1]} : vector<8x2xf32> to vector<8x1xf32>
    %8 = vector.extract_strided_slice %6 {offsets = [0, 0], sizes = [1, 32], strides = [1, 1]} : vector<2x32xf32> to vector<1x32xf32>
    %9 = vector.broadcast %7 : vector<8x1xf32> to vector<8x32xf32>
    %10 = vector.broadcast %8 : vector<1x32xf32> to vector<8x32xf32>
    %11 = arith.mulf %9, %10 : vector<8x32xf32>
    %12 = arith.addf %3, %11 : vector<8x32xf32>
    %13 = vector.extract_strided_slice %5 {offsets = [0, 1], sizes = [8, 1], strides = [1, 1]} : vector<8x2xf32> to vector<8x1xf32>
    %14 = vector.extract_strided_slice %6 {offsets = [1, 0], sizes = [1, 32], strides = [1, 1]} : vector<2x32xf32> to vector<1x32xf32>
    %15 = vector.broadcast %13 : vector<8x1xf32> to vector<8x32xf32>
    %16 = vector.broadcast %14 : vector<1x32xf32> to vector<8x32xf32>
    %17 = arith.mulf %15, %16 : vector<8x32xf32>
    %18 = arith.addf %12, %17 : vector<8x32xf32>
    %cst = arith.constant dense<0.000000e+00> : vector<8xf32>
    %19 = vector.multi_reduction <add>, %18, %cst [1] : vector<8x32xf32> to vector<8xf32>
    %20 = vector.shape_cast %19 : vector<8xf32> to vector<8x1xf32>
    %cst_9 = arith.constant 3.125000e-02 : f32
    %21 = vector.broadcast %cst_9 : f32 to vector<8x1xf32>
    %22 = arith.mulf %20, %21 : vector<8x1xf32>
    %23 = vector.broadcast %22 : vector<8x1xf32> to vector<8x32xf32>
    %24 = arith.subf %18, %23 : vector<8x32xf32>
    %25 = arith.mulf %24, %24 : vector<8x32xf32>
    %cst_10 = arith.constant dense<0.000000e+00> : vector<8xf32>
    %26 = vector.multi_reduction <add>, %25, %cst_10 [1] : vector<8x32xf32> to vector<8xf32>
    %27 = vector.shape_cast %26 : vector<8xf32> to vector<8x1xf32>
    %cst_11 = arith.constant 3.125000e-02 : f32
    %28 = vector.broadcast %cst_11 : f32 to vector<8x1xf32>
    %29 = arith.mulf %27, %28 : vector<8x1xf32>
    %cst_12 = arith.constant 9.99999996E-13 : f32
    %30 = vector.broadcast %cst_12 : f32 to vector<8x1xf32>
    %31 = arith.addf %29, %30 : vector<8x1xf32>
    %32 = math.rsqrt %31 : vector<8x1xf32>
    %33 = vector.broadcast %32 : vector<8x1xf32> to vector<8x32xf32>
    %34 = arith.mulf %24, %33 : vector<8x32xf32>
    %c0_13 = arith.constant 0 : index
    %c0_14 = arith.constant 0 : index
    %35 = vector.load %arg6[%c0_13, %c0_14] : memref<1x32xf32, #tpu.memory_space<vmem>>, vector<1x32xf32>
    %c0_15 = arith.constant 0 : index
    %c0_16 = arith.constant 0 : index
    %36 = vector.load %arg7[%c0_15, %c0_16] : memref<1x32xf32, #tpu.memory_space<vmem>>, vector<1x32xf32>
    %37 = vector.broadcast %35 : vector<1x32xf32> to vector<8x32xf32>
    %38 = arith.mulf %37, %34 : vector<8x32xf32>
    %39 = vector.broadcast %36 : vector<1x32xf32> to vector<8x32xf32>
    %40 = arith.addf %38, %39 : vector<8x32xf32>
    %c0_17 = arith.constant 0 : index
    %c0_18 = arith.constant 0 : index
    %c0_19 = arith.constant 0 : index
    %41 = vector.load %arg8[%c0_17, %c0_18, %c0_19] : memref<1x8x32xf32, #tpu.memory_space<vmem>>, vector<1x8x32xf32>
    %42 = vector.shape_cast %41 : vector<1x8x32xf32> to vector<8x32xf32>
    %43 = vector.shape_cast %40 : vector<8x32xf32> to vector<1x8x32xf32>
    tpu.vector_store %arg8[%c0_17, %c0_18, %c0_19], %43 {strides = array<i32>} : memref<1x8x32xf32, #tpu.memory_space<vmem>>, vector<1x8x32xf32>,
    return
  }
  func.func @transform_0(%arg0: i32, %arg1: i32) -> (i32, i32, i32) {
    %c0_i32 = arith.constant 0 : i32
    %c0_i32_0 = arith.constant 0 : i32
    return %arg1, %arg0, %c0_i32 : i32, i32, i32
  }
  func.func @transform_1(%arg0: i32, %arg1: i32) -> (i32, i32) {
    %c0_i32 = arith.constant 0 : i32
    %c0_i32_0 = arith.constant 0 : i32
    return %arg0, %c0_i32 : i32, i32
  }
  func.func @transform_2(%arg0: i32, %arg1: i32) -> (i32, i32, i32) {
    %c0_i32 = arith.constant 0 : i32
    %c0_i32_0 = arith.constant 0 : i32
    return %arg1, %arg0, %c0_i32 : i32, i32, i32
  }
  func.func @transform_3(%arg0: i32, %arg1: i32) -> (i32, i32) {
    %c0_i32 = arith.constant 0 : i32
    %c0_i32_0 = arith.constant 0 : i32
    %c0_i32_1 = arith.constant 0 : i32
    return %c0_i32, %c0_i32_0 : i32, i32
  }
  func.func @transform_4(%arg0: i32, %arg1: i32) -> (i32, i32) {
    %c0_i32 = arith.constant 0 : i32
    %c0_i32_0 = arith.constant 0 : i32
    %c0_i32_1 = arith.constant 0 : i32
    return %c0_i32, %c0_i32_0 : i32, i32
  }
  func.func @transform_5(%arg0: i32, %arg1: i32) -> (i32, i32) {
    %c0_i32 = arith.constant 0 : i32
    %c0_i32_0 = arith.constant 0 : i32
    %c0_i32_1 = arith.constant 0 : i32
    return %c0_i32, %c0_i32_0 : i32, i32
  }
  func.func @transform_6(%arg0: i32, %arg1: i32) -> (i32, i32, i32) {
    %c0_i32 = arith.constant 0 : i32
    %c0_i32_0 = arith.constant 0 : i32
    return %arg1, %arg0, %c0_i32 : i32, i32, i32
  }
}

</mosaic_0001>

<bundles_post_ra>
// kernel: tpu_custom_call.1
= control target key start
LH: loop header
LB: loop body
LE: loop exit
PB: predicated region body
PF: predicated region fallthrough
CT: control target
= control target key end

     0   :  { %11 = vsyncpa [#allocation3], 0  ;;  %s899_s0 = inlined_call_operand.vmem [shape: f32[2,8,32], index: 0, kind: input, shape index: {}]   ;;  %s900_s1 = inlined_call_operand.hbm [shape: f32[16,32], index: 1, kind: input, shape index: {}]   ;;  %s901_s2 = inlined_call_operand.vmem [shape: f32[2,8,2], index: 2, kind: input, shape index: {}]   ;;  %s902_s3 = inlined_call_operand.vmem [shape: f32[2,32], index: 3, kind: input, shape index: {}]   ;;  %s903_s4 = inlined_call_operand.vmem [shape: f32[1,32], index: 4, kind: input, shape index: {}]   ;;  %s904_s5 = inlined_call_operand.vmem [shape: f32[1,32], index: 5, kind: input, shape index: {}]   ;;  %s905_s6 = inlined_call_operand.hbm [shape: f32[2,8,32], index: 6, kind: output, shape index: {}]  }
   0x1   :  { %12 = vsyncpa [#allocation4], 0 }
   0x2   :  { %14 = vsyncpa [#allocation4 + $0x1], 0  ;;  %s731_s21 = smov 0   ;;  %s733_s22 = smov 0  }
   0x3   :  { %s735_s23 = smov 0   ;;  %s737_s24 = smov 0  }
   0x4   :  { %s739_s25 = smov 0   ;;  %s741_s26 = smov 0  }
   0x5 LB: > { %s492_s27 = sadd.s32 4294967295, %s690_s26   ;;  %s493_s28 = sadd.s32 4294967294, %s690_s26   ;;  %s690_s26 = sphi %s741_s26, %s20_s26   ;;  %s686_s25 = sphi %s739_s25, %s923_s25   ;;  %s682_s24 = sphi %s737_s24, %s922_s24   ;;  %s678_s23 = sphi %s735_s23, %s921_s23   ;;  %s674_s22 = sphi %s733_s22, %s920_s22   ;;  %s670_s21 = sphi %s731_s21, %s919_s21  }
   0x6   : > { %s29_s29 = sadd.s32 1, %s686_s25  ;;  %s186_s30 = sadd.s32 1, %s678_s23 }
   0x7   : > { %p30_p0 = scmp.ge.s32.totalorder %s29_s29, 2  ;;  %p196_p1 = scmp.ne.s32.totalorder %s678_s23, %s674_s22 }
   0x8   : > { %p197_p2 = scmp.eq.s32.totalorder %s492_s27, 1  ;;  %p202_p3 = scmp.ne.s32.totalorder %s674_s22, %s670_s21 }
   0x9   : > { %s925_s29 = smov (%p30_p0, %s29_s29), 0  ;;  %p203_p5 = scmp.eq.s32.totalorder %s493_s28, 1 }
   0xa   : > { %p771_p4 = por %p197_p2, %p196_p1  ;;  %s181_s8 = ssub.s32 %s686_s25, %s925_s29 }
   0xb   : > { %p494_p6 = scmp.ge.s32.totalorder %s690_s26, 1  ;;  %p184_p7 = scmp.eq.s32.totalorder %s181_s8, 0 }
   0xc   : > { %s910_s7 = scalar_select %p771_p4, 1, 0 }
   0xd   : > { %p778_p8 = por %p203_p5, %p202_p3  ;;  %p210_p9 = scmp.lt.s32.totalorder %s690_s26, 3 }
   0xe   : > { %s784_s10 = scalar_select %p184_p7, %s678_s23, %s186_s30  }
   0xf   : > { %s911_s9 = scalar_select %p778_p8, 1, 0 }
  0x10   : > { %p786_p10 = pnand %p494_p6, %p210_p9  ;;  %p790_p11 = scmp.eq.s32.totalorder %s492_s27, 0 }
  0x11   : > { %s692_s13 = smov [#allocation2]   ;;  %s580_s18 = scalar_lea.hbm %s900_s1, 128 }
  0x12   : > { %s912_s11 = scalar_select %p786_p10, 1, 0 }
  0x13   : > { %s913_s12 = scalar_select %p790_p11, 1, 0 }
  0x14   : > { %p514_p12 = pneg %p786_p10  ;;  %s225_s14 = sshll.u32 %s692_s13, 4  ;;  %s226_s14 = int_to_ptr.vmem [resolvable:$true] %s225_s14 }
  0x15   : > { %p581_p0 = scmp.ne.s32.totalorder %s900_s1, %s580_s18  ;;  %s585_s30 = scalar_lea.hbm %s900_s1, 256 }
  0x16   : > { %p798_p13 = pnand %p790_p11, %p514_p12  ;;  %p586_p5 = scmp.lt.u32.totalorder %s585_s30, %s580_s18 }
  0x17   : > { %p587_p6 = scmp.lt.u32.totalorder %s580_s18, %s900_s1 }
  0x18   : > { %p582_p1 = pneg %p798_p13 }
  0x19   : > { %p588_p7 = por %p587_p6, %p586_p5 }
  0x1a   : > { %p583_p2 = pnand %p582_p1, %p581_p0 }
  0x1c   : > { %p584_p3 = pneg %p583_p2 }
  0x1e   : > { %p589_p9 = pnand %p588_p7, %p584_p3 }
  0x20   : > { %592 = shalt.err (!%p589_p9)
}
  0x21   : > { %s593_s16 = scalar_lea.vmem %s226_s14, 128  ;;  %p601_p11 = scmp.lt.s32.totalorder %s226_s14, %s226_s14 }
  0x22   : > { %p594_p12 = scmp.ne.s32.totalorder %s226_s14, %s593_s16  ;;  %p602_p10 = scmp.lt.s32.totalorder %s593_s16, %s593_s16 }
  0x24   : > { %p596_p8 = pnand %p594_p12, %p582_p1  ;;  %p603_p0 = por %p602_p10, %p601_p11 }
  0x26   : > { %p597_p4 = pneg %p596_p8 }
  0x28   : > { %p604_p2 = pnand %p603_p0, %p597_p4 }
  0x2a   : > { %607 = shalt.err (!%p604_p2)
}
  0x2b   : > { %517 = dma.hbm_to_vmem [thread:$0]  (!%p798_p13), %s900_s1, 128, %s226_s14, [#allocation3]  }
  0x2c   : > { %p915_p5 = scmp.ne.s32.totalorder %s912_s11, 0 }
  0x2d   : > { %p916_p3 = scmp.ne.s32.totalorder (!%p915_p5), %s913_s12, 0 }
  0x2e   : > { %267 = sbr.rel (%p915_p5) target bundleno = 525 (0x20d), region = 44 }
  0x35   : > { %661 = dma.done.wait (%p916_p3), [#allocation3], 128  }
  0x36   : > { %663 = vsyncadd (%p916_p3), [#allocation3], 4294967168  ;;  %p306_p8 = scmp.lt.s32.totalorder %s682_s24, 1  ;;  %v693_v0 = vmov 0   ;;  %v694_v2 = vmov 1   ;;  %v330_v3 = vlaneseq  ;;  %v321_v10 = vld [vmem:[#allocation2] sm:$0xff] }
  0x37   : > { %576 = vset.pattern.permute.xlu0 %v693_v0  ;;  %v324_v6 = vld [vmem:[%s902_s3] sm:$0x3]  ;;  %vm346_vm0 = vcmask 261120   ;;  %s303_s13 = sand.u32 1, %s674_s22   ;;  %s505_s20 = sshll.u32 %s682_s24, 7 }
  0x38   : > { %s307_s18 = scalar_select %p306_p8, %s682_s24, 1  ;;  %v331_v4 = vshrl.u32 %v330_v3, 7  ;;  %v502_v29 = vld [vmem:[%s903_s4] ss:$0 sm:$0xff] }
  0x39   : > { %s499_s16 = sshll.u32 %s303_s13, 3  ;;  %v503_v31 = vld [vmem:[%s904_s5] ss:$0 sm:$0xff]  ;;  %s851_s28 = scalar_lea.hbm %s905_s6, %s505_s20 }
  0x3a   : > { %s500_s15 = sshll.u32 %s307_s18, 3  ;;  %v332_v5 = vsub.s32 0, %v331_v4  ;;  %v342_v8 = vsub.s32 1, %v331_v4  ;;  %s305_s27 = scalar_lea.vmem [#allocation5], %s499_s16 }
  0x3b   : > { %s319_s14 = scalar_lea.vmem %s901_s2, %s500_s15  ;;  %s312_s8 = scalar_lea.vmem %s899_s0, %s500_s15 }
  0x3c   : > { %v323_v1 = vld [vmem:[%s319_s14] sm:$0xff]  ;;  %v333_v7 = vrot.slane %v324_v6, %v332_v5  ;;  %v343_v14 = vrot.slane %v324_v6, %v342_v8  ;;  %s392_s14 = sshll.u32 %s305_s27, 4  ;;  %s378_s30 = scalar_lea.sflag [#allocation4], %s303_s13  ;;  %s853_s14 = int_to_ptr.vmem [resolvable:$true] %s392_s14 }
  0x3d   : > { %327 = vperm.xlu0 %576, %v323_v1   ;;  %v320_v9 = vld [vmem:[%s312_s8] sm:$0xff]  ;;  %s608_s8 = scalar_lea.vmem %s853_s14, 128  ;;  %p917_p10 = scmp.ne.s32.totalorder %s910_s7, 0 }
  0x3e   : > { %v322_v12 = vadd.f32 %v321_v10, %v320_v9  ;;  %p609_p4 = scmp.ne.s32.totalorder %s853_s14, %s608_s8  ;;  %s695_s24 = smov [#allocation5]  }
  0x3f   : > { %s612_s16 = sshll.u32 %s695_s24, 4  ;;  %s613_s16 = int_to_ptr.vmem [resolvable:$false] %s612_s16 }
  0x40   : > { %p610_p11 = pnand %p609_p4, %p917_p10  ;;  %s614_s17 = scalar_lea.vmem %s613_s16, 256 }
  0x41   : > { %577 = vset.pattern.permute.xlu0 %v694_v2  ;;  %p615_p1 = scmp.lt.s32.totalorder %s853_s14, %s613_s16  ;;  %p616_p6 = scmp.lt.s32.totalorder %s614_s17, %s608_s8 }
  0x42   : > { %337 = vperm.xlu0 %577, %v323_v1   ;;  %p611_p13 = pneg %p610_p11 }
  0x43   : > { %p617_p7 = por %p616_p6, %p615_p1 }
  0x45   : > { %p618_p9 = pnand %p617_p7, %p611_p13 }
  0xbc   : > { %v328_v11 = vpop.permute.xlu0 %327 }
  0xbd   : > { %v334_v13 = vmul.f32 %v333_v7, %v328_v11 }
  0xbf   : > { %v335_v16 = vadd.f32 %v334_v13, %v322_v12 }
  0xc1   : > { %v338_v15 = vpop.permute.xlu0 %337 }
  0xc2   : > { %v344_v17 = vmul.f32 %v343_v14, %v338_v15 }
  0xc4   : > { %v345_v18 = vadd.f32 %v344_v17, %v335_v16 }
  0xc6   : > { %v347_v19 = vsel %vm346_vm0, %v345_v18, 0.0 }
  0xc7   : > { %348 = vadd.xlane.f32.xlu1 %v347_v19 }
 0x154   : > { %v349_v20 = vpop.xlane.xlu1 %348 }
 0x155   : > { %v350_v21 = vmul.f32 0.03125, %v349_v20 }
 0x157   : > { %v351_v22 = vsub.f32 %v345_v18, %v350_v21 }
 0x159   : > { %v352_v23 = vmul.f32 %v351_v22, %v351_v22 }
 0x15b   : > { %v353_v24 = vsel %vm346_vm0, %v352_v23, 0.0 }
 0x15c   : > { %354 = vadd.xlane.f32.xlu1 %v353_v24 }
 0x1e9   : > { %v355_v25 = vpop.xlane.xlu1 %354 }
 0x1ea   : > { %v356_v26 = vmul.f32 0.03125, %v355_v25 }
 0x1ec   : > { %v357_v27 = vadd.f32 1e-12, %v356_v26 }
 0x1ee   : > { %578 = vrsqrt.f32 %v357_v27 }
 0x1f8   : > { %v579_v28 = vpop.eup %578 }
 0x1f9   : > { %v359_v30 = vmul.f32 %v579_v28, %v351_v22 }
 0x1fb   : > { %v368_v32 = vmul.f32 %v502_v29, %v359_v30 }
 0x1fd   : > { %v375_v33 = vadd.f32 %v503_v31, %v368_v32 }
 0x1ff   : > { %376 = vst.msk [vmem:[%s305_s27] sm:$0xff] %vm346_vm0, %v375_v33 }
 0x200   : > { %621 = shalt.err (!%p618_p9)
}
 0x201   : > { %s622_s13 = scalar_lea.hbm %s851_s28, 128  ;;  %s626_s15 = scalar_lea.hbm %s905_s6, 256 }
 0x202   : > { %p623_p12 = scmp.ne.s32.totalorder %s851_s28, %s622_s13  ;;  %p627_p5 = scmp.lt.u32.totalorder %s851_s28, %s905_s6 }
 0x203   : > { %p628_p3 = scmp.lt.u32.totalorder %s626_s15, %s622_s13  ;;  %p630_p4 = scmp.lt.u32.totalorder %s622_s13, %s851_s28 }
 0x204   : > { %p624_p0 = pnand %p623_p12, %p917_p10 }
 0x205   : > { %p629_p8 = por %p628_p3, %p627_p5 }
 0x206   : > { %p625_p2 = pneg %p624_p0 }
 0x207   : > { %p631_p11 = por %p630_p4, %p629_p8 }
 0x209   : > { %p632_p13 = pnand %p631_p11, %p625_p2 }
 0x20b   : > { %635 = shalt.err (!%p632_p13)
}
 0x20c   : > { %512 = dma.vmem_to_hbm [thread:$0]  (%p917_p10), %s853_s14, 128, %s851_s28, %s378_s30  }
 0x20d PF: > { %p524_p1 = scmp.ge.s32.totalorder %s690_s26, 2  ;;  %s404_s11 = sand.u32 1, %s670_s21  }
 0x20e   : > { %p918_p6 = scmp.ne.s32.totalorder %s911_s9, 0  ;;  %s405_s12 = scalar_lea.sflag [#allocation4], %s404_s11 }
 0x210   : > { %p519_p7 = pnand %p524_p1, %p918_p6 }
 0x212   : > { %665 = dma.done.wait (!%p519_p7), %s405_s12, 128  }
 0x213   : > { %667 = vsyncadd (!%p519_p7), %s405_s12, 4294967168  ;;  %s20_s26 = sadd.s32 1, %s690_s26   ;;  %s919_s21 = smov %s674_s22 }
 0x214   : > { %p17_p9 = scmp.ge.s32.totalorder %s20_s26, 4   ;;  %s920_s22 = smov %s678_s23 }
 0x215   : > { %s921_s23 = smov %s784_s10  ;;  %s922_s24 = smov %s686_s25 }
 0x216   : > { %s923_s25 = smov %s925_s29  ;;  %19 = sbr.rel (!%p17_p9) target bundleno = 5 (0x5), region = 88 }
 0x21d   :  { %410 = vsyncpa [#allocation3], 1 }
 0x21e   :  { %412 = vsyncpa [#allocation3 + $0x1], 1 }
 0x21f   :  { %413 = vsyncpa [#allocation4], 1 }
 0x220   :  { %415 = vsyncpa [#allocation4 + $0x1], 1 }

</bundles_post_ra>
